<compile_context>
chip_gen: v7x
topology: tpu7x:2x2x1
jax: 0.10.0
libtpu: 0.0.40
codegen_flags: <defaults>
</compile_context>

<pallas_src>
import functools

import jax
import jax.numpy as jnp
from jax.experimental import pallas as pl
from jax.experimental.pallas import tpu as pltpu


# ----------------------------- Pallas kernel ------------------------------- #

def _gating_kernel(x_ref, w_ref, probs_ref, idx_ref, logit_ref, *, top_k):
    x = x_ref[...]                                               # [TM, H]
    w = w_ref[...]                                               # [H, E]
    logits = jnp.dot(x, w, preferred_element_type=jnp.float32)   # [TM, E]  (MXU)
    logit_ref[...] = logits

    tm, e = logits.shape
    col = jax.lax.broadcasted_iota(jnp.int32, (tm, e), 1)        # expert id per lane
    neg = jnp.finfo(jnp.float32).min

    masked = logits
    sel = col < 0                                                # all-False mask
    idx_out = jnp.zeros((tm, top_k), dtype=jnp.int32)
    lane_k = jax.lax.broadcasted_iota(jnp.int32, (tm, top_k), 1)
    top1 = None

    # top-k via K rounds of masked argmax; K and E are static & tiny -> unrolled.
    for k in range(top_k):
        cur = jnp.max(masked, axis=-1, keepdims=True)            # [TM, 1]
        if k == 0:
            top1 = cur                                           # finite row max
        is_max = masked == cur
        # first (lowest-index) argmax, matching top_k tie-breaking
        idx_k = jnp.min(jnp.where(is_max, col, e), axis=-1, keepdims=True)
        idx_out = jnp.where(lane_k == k, idx_k, idx_out)
        hit = col == idx_k
        sel = jnp.logical_or(sel, hit)
        masked = jnp.where(hit, neg, masked)

    idx_ref[...] = idx_out

    # sparse softmax: softmax over the selected top-k logits, exact 0 elsewhere
    # (identical to scatter(-inf) + softmax, without any inf arithmetic).
    ex = jnp.where(sel, jnp.exp(logits - top1), 0.0)
    denom = jnp.sum(ex, axis=-1, keepdims=True)
    probs_ref[...] = ex / denom


# ------------------------------- wrapper ------------------------------------ #

def gating_forward(x, wgate_t, top_k):
    """x: [B, S, H]; wgate_t: [H, E] (pre-transposed Linear weight, no bias).

    Returns (sparse_probs [B,S,E], indices [B,S,K], gate_logit [B*S,E])."""
    B, S, H = x.shape
    E = wgate_t.shape[1]
    T = B * S
    x_flat = x.reshape(T, H)

    # Token-tile grid axis ("parallel"): one step at toy sizes; shards across
    # TensorCores and gives the pipeline something to double-buffer at scale.
    TM = T if T <= 256 else 256

    probs, indices, gate_logit = pl.pallas_call(
        functools.partial(_gating_kernel, top_k=top_k),
        out_shape=(
            jax.ShapeDtypeStruct((T, E), jnp.float32),
            jax.ShapeDtypeStruct((T, top_k), jnp.int32),
            jax.ShapeDtypeStruct((T, E), jnp.float32),
        ),
        grid=(pl.cdiv(T, TM),),
        in_specs=[
            pl.BlockSpec((TM, H), lambda i: (i, 0)),
            pl.BlockSpec((H, E), lambda i: (0, 0)),
        ],
        out_specs=[
            pl.BlockSpec((TM, E), lambda i: (i, 0)),
            pl.BlockSpec((TM, top_k), lambda i: (i, 0)),
            pl.BlockSpec((TM, E), lambda i: (i, 0)),
        ],
        compiler_params=pltpu.CompilerParams(
            dimension_semantics=("parallel",)),
    )(x_flat, wgate_t)

    return probs.reshape(B, S, E), indices.reshape(B, S, top_k), gate_logit


# ------------------------------- reference ---------------------------------- #

def gating_reference(x, wgate_t, top_k):
    B, S, H = x.shape
    E = wgate_t.shape[1]
    x_flat = x.reshape(-1, H)
    logits = x_flat @ wgate_t
    topk_vals, indices = jax.lax.top_k(logits, top_k)
    sel = jnp.sum(jax.nn.one_hot(indices, E, dtype=jnp.float32), axis=1) > 0
    sparse_logits = jnp.where(sel, logits, -jnp.inf)
    sparse_probs = jax.nn.softmax(sparse_logits, axis=-1)
    return (sparse_probs.reshape(B, S, E),
            indices.reshape(B, S, top_k).astype(jnp.int32),
            logits)


# --------------------------------- main -------------------------------------- #

if __name__ == "__main__":
    # config: hidden_size=32, expert_num=4, top_k=2, mlp_bias=False
    B, S, H, E, K = 2, 8, 32, 4, 2

    key = jax.random.PRNGKey(0)
    kx, kw = jax.random.split(key, 2)

    x = jax.random.normal(kx, (B, S, H), dtype=jnp.float32)
    # nn.Linear weight is [E, H]; stored pre-transposed as [H, E], bias=False.
    # TODO(synk): add a bias term if config.mlp_bias=True is ever required.
    wgate_t = 0.02 * jax.random.normal(kw, (H, E), dtype=jnp.float32)

    probs, indices, gate_logit = gating_forward(x, wgate_t, K)
    probs = jax.block_until_ready(probs)
    indices = jax.block_until_ready(indices)
    gate_logit = jax.block_until_ready(gate_logit)

    ref_probs, ref_idx, ref_logit = gating_reference(x, wgate_t, K)

    assert probs.shape == (B, S, E)
    assert indices.shape == (B, S, K)
    assert gate_logit.shape == (B * S, E)
    assert jnp.allclose(gate_logit, ref_logit, atol=1e-5, rtol=1e-5)
    assert jnp.allclose(probs, ref_probs, atol=1e-5, rtol=1e-5)
    assert jnp.array_equal(indices, ref_idx)
    # sanity: exactly K nonzero routing weights per token, each row sums to 1
    assert jnp.allclose(probs.sum(-1), 1.0, atol=1e-5)
    assert int((probs > 0).sum()) == B * S * K

    print("KERNEL_OK")
</pallas_src>

<mosaic_0001>
module attributes {stable_mosaic.version = 11 : i64} {
  func.func @_gating_kernel(%arg0: i32, %arg1: memref<16x32xf32, #tpu.memory_space<vmem>>, %arg2: memref<32x4xf32, #tpu.memory_space<vmem>>, %arg3: memref<16x4xf32, #tpu.memory_space<vmem>>, %arg4: memref<16x2xi32, #tpu.memory_space<vmem>>, %arg5: memref<16x4xf32, #tpu.memory_space<vmem>>) attributes {dimension_semantics = [#tpu.dimension_semantics<parallel>], iteration_bounds = array<i64: 1>, scalar_prefetch = 0 : i64, scratch_operands = 0 : i64, tpu.core_type = #tpu.core_type<tc>, window_params = [{transform_indices = @transform_0, window_bounds = array<i64: 16, 32>}, {pipeline_mode = #tpu.pipeline_mode<synchronous>, transform_indices = @transform_1, window_bounds = array<i64: 32, 4>}, {transform_indices = @transform_2, window_bounds = array<i64: 16, 4>}, {transform_indices = @transform_3, window_bounds = array<i64: 16, 2>}, {transform_indices = @transform_4, window_bounds = array<i64: 16, 4>}]} {
    %c0 = arith.constant 0 : index
    %c0_0 = arith.constant 0 : index
    %0 = vector.load %arg1[%c0, %c0_0] : memref<16x32xf32, #tpu.memory_space<vmem>>, vector<16x32xf32>
    %c0_1 = arith.constant 0 : index
    %c0_2 = arith.constant 0 : index
    %1 = vector.load %arg2[%c0_1, %c0_2] : memref<32x4xf32, #tpu.memory_space<vmem>>, vector<32x4xf32>
    %cst = arith.constant dense<0.000000e+00> : vector<16x4xf32>
    %2 = tpu.matmul %0, %1, %cst {dimension_numbers = #tpu.dot_dimension_numbers<[1], [0], [0], [1], [0, 0, 1, 1], [], []>} : vector<16x32xf32>, vector<32x4xf32>, vector<16x4xf32> -> vector<16x4xf32>
    %c0_3 = arith.constant 0 : index
    %c0_4 = arith.constant 0 : index
    %3 = vector.load %arg5[%c0_3, %c0_4] : memref<16x4xf32, #tpu.memory_space<vmem>>, vector<16x4xf32>
    tpu.vector_store %arg5[%c0_3, %c0_4], %2 {strides = array<i32>} : memref<16x4xf32, #tpu.memory_space<vmem>>, vector<16x4xf32>,
    %4 = tpu.iota {dimensions = array<i32: 1>} : vector<16x4xi32>
    %c0_i32 = arith.constant 0 : i32
    %5 = vector.broadcast %c0_i32 : i32 to vector<16x4xi32>
    %6 = arith.cmpi slt, %4, %5 : vector<16x4xi32>
    %c0_i32_5 = arith.constant 0 : i32
    %7 = vector.broadcast %c0_i32_5 : i32 to vector<16x2xi32>
    %8 = tpu.iota {dimensions = array<i32: 1>} : vector<16x2xi32>
    %cst_6 = arith.constant dense<0xFF800000> : vector<16xf32>
    %9 = vector.multi_reduction <maximumf>, %2, %cst_6 [1] : vector<16x4xf32> to vector<16xf32>
    %10 = vector.shape_cast %9 : vector<16xf32> to vector<16x1xf32>
    %11 = vector.broadcast %10 : vector<16x1xf32> to vector<16x4xf32>
    %12 = arith.cmpf oeq, %2, %11 : vector<16x4xf32>
    %c4_i32 = arith.constant 4 : i32
    %13 = vector.broadcast %c4_i32 : i32 to vector<16x4xi32>
    %14 = arith.select %12, %4, %13 : vector<16x4xi1>, vector<16x4xi32>
    %cst_7 = arith.constant dense<2147483647> : vector<16xi32>
    %15 = vector.multi_reduction <minsi>, %14, %cst_7 [1] : vector<16x4xi32> to vector<16xi32>
    %16 = vector.shape_cast %15 : vector<16xi32> to vector<16x1xi32>
    %c0_i32_8 = arith.constant 0 : i32
    %17 = vector.broadcast %c0_i32_8 : i32 to vector<16x2xi32>
    %18 = arith.cmpi eq, %8, %17 : vector<16x2xi32>
    %19 = vector.shape_cast %16 : vector<16x1xi32> to vector<16x1xi32>
    %20 = vector.broadcast %19 : vector<16x1xi32> to vector<16x2xi32>
    %21 = arith.select %18, %20, %7 : vector<16x2xi1>, vector<16x2xi32>
    %22 = vector.broadcast %16 : vector<16x1xi32> to vector<16x4xi32>
    %23 = arith.cmpi eq, %4, %22 : vector<16x4xi32>
    %24 = arith.ori %6, %23 : vector<16x4xi1>
    %cst_9 = arith.constant -3.40282347E+38 : f32
    %25 = vector.broadcast %cst_9 : f32 to vector<16x4xf32>
    %26 = arith.select %23, %25, %2 : vector<16x4xi1>, vector<16x4xf32>
    %cst_10 = arith.constant dense<0xFF800000> : vector<16xf32>
    %27 = vector.multi_reduction <maximumf>, %26, %cst_10 [1] : vector<16x4xf32> to vector<16xf32>
    %28 = vector.shape_cast %27 : vector<16xf32> to vector<16x1xf32>
    %29 = vector.broadcast %28 : vector<16x1xf32> to vector<16x4xf32>
    %30 = arith.cmpf oeq, %26, %29 : vector<16x4xf32>
    %c4_i32_11 = arith.constant 4 : i32
    %31 = vector.broadcast %c4_i32_11 : i32 to vector<16x4xi32>
    %32 = arith.select %30, %4, %31 : vector<16x4xi1>, vector<16x4xi32>
    %cst_12 = arith.constant dense<2147483647> : vector<16xi32>
    %33 = vector.multi_reduction <minsi>, %32, %cst_12 [1] : vector<16x4xi32> to vector<16xi32>
    %34 = vector.shape_cast %33 : vector<16xi32> to vector<16x1xi32>
    %c1_i32 = arith.constant 1 : i32
    %35 = vector.broadcast %c1_i32 : i32 to vector<16x2xi32>
    %36 = arith.cmpi eq, %8, %35 : vector<16x2xi32>
    %37 = vector.shape_cast %34 : vector<16x1xi32> to vector<16x1xi32>
    %38 = vector.broadcast %37 : vector<16x1xi32> to vector<16x2xi32>
    %39 = arith.select %36, %38, %21 : vector<16x2xi1>, vector<16x2xi32>
    %40 = vector.broadcast %34 : vector<16x1xi32> to vector<16x4xi32>
    %41 = arith.cmpi eq, %4, %40 : vector<16x4xi32>
    %42 = arith.ori %24, %41 : vector<16x4xi1>
    %c0_13 = arith.constant 0 : index
    %c0_14 = arith.constant 0 : index
    %43 = vector.load %arg4[%c0_13, %c0_14] : memref<16x2xi32, #tpu.memory_space<vmem>>, vector<16x2xi32>
    tpu.vector_store %arg4[%c0_13, %c0_14], %39 {strides = array<i32>} : memref<16x2xi32, #tpu.memory_space<vmem>>, vector<16x2xi32>,
    %44 = vector.broadcast %10 : vector<16x1xf32> to vector<16x4xf32>
    %45 = arith.subf %2, %44 : vector<16x4xf32>
    %46 = math.exp %45 : vector<16x4xf32>
    %cst_15 = arith.constant 0.000000e+00 : f32
    %47 = vector.broadcast %cst_15 : f32 to vector<16x4xf32>
    %48 = arith.select %42, %46, %47 : vector<16x4xi1>, vector<16x4xf32>
    %cst_16 = arith.constant dense<0.000000e+00> : vector<16xf32>
    %49 = vector.multi_reduction <add>, %48, %cst_16 [1] : vector<16x4xf32> to vector<16xf32>
    %50 = vector.shape_cast %49 : vector<16xf32> to vector<16x1xf32>
    %51 = vector.broadcast %50 : vector<16x1xf32> to vector<16x4xf32>
    %52 = arith.divf %48, %51 : vector<16x4xf32>
    %c0_17 = arith.constant 0 : index
    %c0_18 = arith.constant 0 : index
    %53 = vector.load %arg3[%c0_17, %c0_18] : memref<16x4xf32, #tpu.memory_space<vmem>>, vector<16x4xf32>
    tpu.vector_store %arg3[%c0_17, %c0_18], %52 {strides = array<i32>} : memref<16x4xf32, #tpu.memory_space<vmem>>, vector<16x4xf32>,
    return
  }
  func.func @transform_0(%arg0: i32) -> (i32, i32) {
    %c0_i32 = arith.constant 0 : i32
    %c0_i32_0 = arith.constant 0 : i32
    return %arg0, %c0_i32 : i32, i32
  }
  func.func @transform_1(%arg0: i32) -> (i32, i32) {
    %c0_i32 = arith.constant 0 : i32
    %c0_i32_0 = arith.constant 0 : i32
    %c0_i32_1 = arith.constant 0 : i32
    return %c0_i32, %c0_i32_0 : i32, i32
  }
  func.func @transform_2(%arg0: i32) -> (i32, i32) {
    %c0_i32 = arith.constant 0 : i32
    %c0_i32_0 = arith.constant 0 : i32
    return %arg0, %c0_i32 : i32, i32
  }
  func.func @transform_3(%arg0: i32) -> (i32, i32) {
    %c0_i32 = arith.constant 0 : i32
    %c0_i32_0 = arith.constant 0 : i32
    return %arg0, %c0_i32 : i32, i32
  }
  func.func @transform_4(%arg0: i32) -> (i32, i32) {
    %c0_i32 = arith.constant 0 : i32
    %c0_i32_0 = arith.constant 0 : i32
    return %arg0, %c0_i32 : i32, i32
  }
}

</mosaic_0001>

<bundles_post_ra>
// kernel: tpu_custom_call.1
= control target key start
LH: loop header
LB: loop body
LE: loop exit
PB: predicated region body
PF: predicated region fallthrough
CT: control target
= control target key end

     0   :  { %vm20_vm0 = vcmask 261120   ;;  %vm102_vm1 = vcmask 31744   ;;  %v105_v12 = vlaneseq  ;;  %vm204_vm14 = vcmask 15360   ;;  %s410_s1 = inlined_call_operand.vmem [shape: f32[32,4], index: 1, kind: input, shape index: {}]   ;;  %s411_s0 = inlined_call_operand.vmem [shape: f32[16,32], index: 0, kind: input, shape index: {}]   ;;  %s412_s4 = inlined_call_operand.vmem [shape: f32[16,4], index: 4, kind: output, shape index: {2}]   ;;  %s413_s3 = inlined_call_operand.vmem [shape: s32[16,2], index: 3, kind: output, shape index: {1}]   ;;  %s414_s2 = inlined_call_operand.vmem [shape: f32[16,4], index: 2, kind: output, shape index: {0}]  }
   0x1   :  { %v16_v0 = vld [vmem:[%s410_s1] sm:$0xff]  ;;  %v17_v1 = vld [vmem:[%s410_s1 + $0x8] sm:$0xff]  ;;  %v18_v2 = vld [vmem:[%s410_s1 + $0x10] sm:$0xff] }
   0x2   :  { %v258_v3 = vpack.c.bf16 %v17_v1, %v16_v0  ;;  %v19_v4 = vld [vmem:[%s410_s1 + $0x18] sm:$0xff]  ;;  %v14_v5 = vld [vmem:[%s411_s0] sm:$0xff]  ;;  %v15_v7 = vld [vmem:[%s411_s0 + $0x8] sm:$0xff]  ;;  %v335_v13 = vand.u32 127, %v105_v12 }
   0x3   :  { %v262_v6 = vpack.c.bf16 %v19_v4, %v18_v2  ;;  %255 = vmatprep.mubr.msk.f32.mxu0 %vm20_vm0, %v14_v5 }
   0x4   :  { %259 = vmatprep.subr.bf16.mxu0 %v258_v3  ;;  %vm148_vm12 = vcmp.eq.s32.totalorder %v335_v13, 0  ;;  %vm197_vm13 = vcmp.eq.s32.totalorder %v335_v13, 1 }
   0x5   :  { %261 = vmatpush3.bf16.msra.mxu0 %v258_v3 }
   0x6   :  { %263 = vmatprep.subr.bf16.mxu0 %v262_v6 }
   0x9   :  { %265 = vmatpush3.bf16.msra.mxu0 %v262_v6 }
   0xc   :  { %256 = vmatmul.mubr.msk.f32.vlgmr.msra.gmra.mrb[0].mxu0 %vm20_vm0, %v15_v7 }
  0xdf   :  { %v317_v8 = vpop.f32.mrb[0].mxu0 }
  0xe0   :  { %v319_v9 = vpop.f32.mrb[1].mxu0  ;;  %104 = vst.msk [vmem:[%s412_s4 + $0x8] sm:$0xff] %vm102_vm1, %v317_v8  ;;  %v111_v11 = vsel %vm102_vm1, %v317_v8, -inf }
  0xe1   :  { %103 = vst.msk [vmem:[%s412_s4] sm:$0xff] %vm102_vm1, %v319_v9  ;;  %v108_v10 = vsel %vm102_vm1, %v319_v9, -inf }
  0xe2   :  { %109 = vmax.xlane.f32.xlu0 %v108_v10 }
  0xe6   :  { %112 = vmax.xlane.f32.xlu0 %v111_v11 }
 0x16f   :  { %v337_v14 = vpop.xlane.xlu0 %109 }
 0x170   :  { %vm114_vm2 = vcmp.eq.f32.partialorder %v319_v9, %v337_v14  ;;  %v207_v15 = vsub.f32 %v319_v9, %v337_v14 }
 0x171   :  { %v116_v16 = vsel %vm114_vm2, %v335_v13, 4 }
 0x172   :  { %v118_v17 = vsel %vm102_vm1, %v116_v16, 2147483647  ;;  %v209_v1 = vmul.f32 1.442695, %v207_v15 }
 0x173   :  { %v345_v18 = vpop.xlane.xlu0 %112  ;;  %v120_v19 = vshra.s32 %v118_v17, 16  ;;  %v119_v25 = vand.u32 65535, %v118_v17 }
 0x174   :  { %vm115_vm3 = vcmp.eq.f32.partialorder %v317_v8, %v345_v18  ;;  %v208_v2 = vsub.f32 %v317_v8, %v345_v18  ;;  %266 = vpow2.f32 %v209_v1 }
 0x175   :  { %v117_v20 = vsel %vm115_vm3, %v335_v13, 4  ;;  %v122_v21 = vcvt.s32.f32 %v120_v19  ;;  %v121_v27 = vcvt.s32.f32 %v119_v25 }
 0x176   :  { %v133_v22 = vsel %vm102_vm1, %v117_v20, 2147483647  ;;  %v211_v3 = vmul.f32 1.442695, %v208_v2 }
 0x177   :  { %123 = vmin.xlane.f32.xlu1 %v122_v21  ;;  %v135_v23 = vshra.s32 %v133_v22, 16  ;;  %v134_v28 = vand.u32 65535, %v133_v22 }
 0x178   :  { %268 = vpow2.f32 %v211_v3 }
 0x179   :  { %v137_v24 = vcvt.s32.f32 %v135_v23  ;;  %v136_v31 = vcvt.s32.f32 %v134_v28 }
 0x17b   :  { %138 = vmin.xlane.f32.xlu1 %v137_v24 }
 0x17e   :  { %v267_v16 = vpop.eup %266 }
 0x182   :  { %v269_v22 = vpop.eup %268 }
 0x204   :  { %v124_v26 = vpop.xlane.xlu1 %123 }
 0x205   :  { %vm125_vm4 = vcmp.eq.f32.partialorder %v122_v21, %v124_v26  ;;  %v130_v33 = vcvt.f32.s32 %v124_v26 }
 0x206   :  { %v126_v29 = vsel %vm125_vm4, %v121_v27, inf }
 0x207   :  { %127 = vmin.xlane.f32.xlu0 %v126_v29  ;;  %v131_v35 = vshll.u32 %v130_v33, 16 }
 0x208   :  { %v139_v30 = vpop.xlane.xlu1 %138 }
 0x209   :  { %vm140_vm5 = vcmp.eq.f32.partialorder %v137_v24, %v139_v30  ;;  %v145_v36 = vcvt.f32.s32 %v139_v30 }
 0x20a   :  { %v141_v32 = vsel %vm140_vm5, %v136_v31, inf }
 0x20b   :  { %142 = vmin.xlane.f32.xlu1 %v141_v32  ;;  %v146_v40 = vshll.u32 %v145_v36, 16 }
 0x294   :  { %v128_v34 = vpop.xlane.xlu0 %127 }
 0x295   :  { %v129_v37 = vcvt.f32.s32 %v128_v34 }
 0x297   :  { %v132_v38 = vadd.s32 %v131_v35, %v129_v37 }
 0x298   :  { %v143_v39 = vpop.xlane.xlu1 %142 }
 0x299   :  { %v144_v41 = vcvt.f32.s32 %v143_v39  ;;  %vm151_vm6 = vcmp.eq.s32.totalorder %v335_v13, %v132_v38 }
 0x29a   :  { %v155_v42 = vsel %vm151_vm6, -3.4028235e+38, %v319_v9  ;;  %v149_v9 = vsel %vm148_vm12, %v132_v38, 0 }
 0x29b   :  { %v355_v43 = vadd.s32 %v146_v40, %v144_v41  ;;  %v157_v44 = vsel %vm102_vm1, %v155_v42, -inf }
 0x29c   :  { %158 = vmax.xlane.f32.xlu0 %v157_v44 }
 0x29d   :  { %vm152_vm7 = vcmp.eq.s32.totalorder %v335_v13, %v355_v43  ;;  %v150_v19 = vsel %vm148_vm12, %v355_v43, 0 }
 0x29e   :  { %v156_v45 = vsel %vm152_vm7, -3.4028235e+38, %v317_v8 }
 0x29f   :  { %v160_v46 = vsel %vm102_vm1, %v156_v45, -inf }
 0x2a0   :  { %161 = vmax.xlane.f32.xlu1 %v160_v46 }
 0x329   :  { %v159_v47 = vpop.xlane.xlu0 %158 }
 0x32a   :  { %vm163_vm8 = vcmp.eq.f32.partialorder %v155_v42, %v159_v47 }
 0x32b   :  { %v165_v48 = vsel %vm163_vm8, %v335_v13, 4 }
 0x32c   :  { %v167_v49 = vsel %vm102_vm1, %v165_v48, 2147483647 }
 0x32d   :  { %v162_v50 = vpop.xlane.xlu1 %161  ;;  %v169_v51 = vshra.s32 %v167_v49, 16  ;;  %v168_v57 = vand.u32 65535, %v167_v49 }
 0x32e   :  { %vm164_vm9 = vcmp.eq.f32.partialorder %v156_v45, %v162_v50 }
 0x32f   :  { %v166_v52 = vsel %vm164_vm9, %v335_v13, 4  ;;  %v171_v53 = vcvt.s32.f32 %v169_v51  ;;  %v170_v59 = vcvt.s32.f32 %v168_v57 }
 0x330   :  { %v182_v54 = vsel %vm102_vm1, %v166_v52, 2147483647 }
 0x331   :  { %172 = vmin.xlane.f32.xlu0 %v171_v53  ;;  %v184_v55 = vshra.s32 %v182_v54, 16  ;;  %v183_v60 = vand.u32 65535, %v182_v54 }
 0x333   :  { %v186_v56 = vcvt.s32.f32 %v184_v55  ;;  %v185_v63 = vcvt.s32.f32 %v183_v60 }
 0x335   :  { %187 = vmin.xlane.f32.xlu1 %v186_v56 }
 0x3be   :  { %v173_v58 = vpop.xlane.xlu0 %172 }
 0x3bf   :  { %vm174_vm10 = vcmp.eq.f32.partialorder %v171_v53, %v173_v58  ;;  %v179_v4 = vcvt.f32.s32 %v173_v58 }
 0x3c0   :  { %v175_v61 = vsel %vm174_vm10, %v170_v59, inf }
 0x3c1   :  { %176 = vmin.xlane.f32.xlu0 %v175_v61  ;;  %v180_v6 = vshll.u32 %v179_v4, 16 }
 0x3c2   :  { %v188_v62 = vpop.xlane.xlu1 %187 }
 0x3c3   :  { %vm189_vm11 = vcmp.eq.f32.partialorder %v186_v56, %v188_v62  ;;  %v194_v7 = vcvt.f32.s32 %v188_v62 }
 0x3c4   :  { %v190_v0 = vsel %vm189_vm11, %v185_v63, inf }
 0x3c5   :  { %191 = vmin.xlane.f32.xlu1 %v190_v0  ;;  %v195_v14 = vshll.u32 %v194_v7, 16 }
 0x44e   :  { %v177_v5 = vpop.xlane.xlu0 %176 }
 0x44f   :  { %v178_v10 = vcvt.f32.s32 %v177_v5 }
 0x451   :  { %v181_v11 = vadd.s32 %v180_v6, %v178_v10 }
 0x452   :  { %v192_v12 = vpop.xlane.xlu1 %191 }
 0x453   :  { %v198_v8 = vsel %vm197_vm13, %v181_v11, %v149_v9  ;;  %v193_v15 = vcvt.f32.s32 %v192_v12  ;;  %vm200_vm15 = vcmp.eq.s32.totalorder %v335_v13, %v181_v11 }
 0x454   :  { %205 = vst.msk [vmem:[%s413_s3] sm:$0xff] %vm204_vm14, %v198_v8  ;;  %vm202_vm0 = vmor %vm151_vm6, %vm200_vm15 }
 0x455   :  { %v196_v17 = vadd.s32 %v195_v14, %v193_v15  ;;  %v213_v18 = vsel %vm202_vm0, %v267_v16, 0.0 }
 0x456   :  { %v215_v20 = vsel %vm102_vm1, %v213_v18, 0.0 }
 0x457   :  { %v199_v21 = vsel %vm197_vm13, %v196_v17, %v150_v19  ;;  %216 = vadd.xlane.f32.xlu0 %v215_v20  ;;  %vm201_vm2 = vcmp.eq.s32.totalorder %v335_v13, %v196_v17 }
 0x458   :  { %206 = vst.msk [vmem:[%s413_s3 + $0x8] sm:$0xff] %vm204_vm14, %v199_v21  ;;  %vm203_vm3 = vmor %vm152_vm7, %vm201_vm2 }
 0x459   :  { %v214_v23 = vsel %vm203_vm3, %v269_v22, 0.0 }
 0x45a   :  { %v218_v24 = vsel %vm102_vm1, %v214_v23, 0.0 }
 0x45b   :  { %219 = vadd.xlane.f32.xlu1 %v218_v24 }
 0x4e4   :  { %v217_v25 = vpop.xlane.xlu0 %216 }
 0x4e5   :  { %270 = vrcp.f32 %v217_v25 }
 0x4e8   :  { %v220_v26 = vpop.xlane.xlu1 %219 }
 0x4e9   :  { %272 = vrcp.f32 %v220_v26 }
 0x4ef   :  { %v271_v27 = vpop.eup %270 }
 0x4f0   :  { %v222_v28 = vmul.f32 %v271_v27, %v213_v18 }
 0x4f2   :  { %225 = vst.msk [vmem:[%s414_s2] sm:$0xff] %vm102_vm1, %v222_v28 }
 0x4f3   :  { %v273_v29 = vpop.eup %272 }
 0x4f4   :  { %v224_v30 = vmul.f32 %v273_v29, %v214_v23 }
 0x4f6   :  { %226 = vst.msk [vmem:[%s414_s2 + $0x8] sm:$0xff] %vm102_vm1, %v224_v30 }

</bundles_post_ra>
